<compile_context>
chip_gen: v5e
topology: v5e:2x2
jax: 0.10.0
libtpu: 0.0.40
codegen_flags: <defaults>
</compile_context>

<pallas_src>
import functools

import jax
import jax.numpy as jnp
from jax.experimental import pallas as pl
from jax.experimental.pallas import tpu as pltpu

BN_EPS = 1e-5
NEG_SLOPE = 0.01  # PyTorch F.leaky_relu default


def _leaky_relu(x):
    return jnp.where(x > 0, x, NEG_SLOPE * x)


def _mlp_body(x, action, w1, b1, w2a, w2b, b2, w3, b3, w4_row, b4):
    """Shared MLP: bf16 MXU matmuls with f32 accumulation; fc4 as VPU reduce."""
    xs = _leaky_relu(
        jnp.dot(x.astype(jnp.bfloat16), w1, preferred_element_type=jnp.float32) + b1)
    h2 = _leaky_relu(
        jnp.dot(xs.astype(jnp.bfloat16), w2a, preferred_element_type=jnp.float32)
        + jnp.dot(action.astype(jnp.bfloat16), w2b, preferred_element_type=jnp.float32)
        + b2)
    h3 = _leaky_relu(
        jnp.dot(h2.astype(jnp.bfloat16), w3, preferred_element_type=jnp.float32) + b3)
    # fc4: (B,128) * (1,128) broadcast mul + lane reduction (VPU + XLU, no MXU)
    return jnp.sum(h3 * w4_row, axis=-1, keepdims=True) + b4


# ----------------------------------------------------------------------------
# Path 1: small batch -> single grid point, BN stats fused in-kernel
# ----------------------------------------------------------------------------
def _critic_fused_kernel(state_ref, action_ref,
                         gamma_ref, beta_ref,
                         w1_ref, b1_ref,
                         w2a_ref, w2b_ref, b2_ref,
                         w3_ref, b3_ref,
                         w4_ref, b4_ref,
                         out_ref):
    state = state_ref[...].astype(jnp.float32)     # (B, S)
    action = action_ref[...].astype(jnp.float32)   # (B, A)

    # --- BatchNorm1d, training mode, fused single-pass stats ---
    inv_b = 1.0 / state.shape[0]
    mean = jnp.sum(state, axis=0, keepdims=True) * inv_b          # (1, S)
    ex2 = jnp.sum(state * state, axis=0, keepdims=True) * inv_b   # (1, S)
    var = ex2 - mean * mean                                        # biased var
    x = (state - mean) * jax.lax.rsqrt(var + BN_EPS)
    x = x * gamma_ref[...] + beta_ref[...]

    q = _mlp_body(x, action,
                  w1_ref[...], b1_ref[...],
                  w2a_ref[...], w2b_ref[...], b2_ref[...],
                  w3_ref[...], b3_ref[...],
                  w4_ref[...], b4_ref[...])
    out_ref[...] = q.astype(out_ref.dtype)


# ----------------------------------------------------------------------------
# Path 2: large batch -> (a) stats accumulation over batch tiles, then
#                        (b) batch-parallel tiled MLP with resident weights
# ----------------------------------------------------------------------------
def _bn_stats_kernel(state_ref, stats_ref):
    @pl.when(pl.program_id(0) == 0)
    def _():
        stats_ref[...] = jnp.zeros_like(stats_ref)
    s = state_ref[...].astype(jnp.float32)
    stats_ref[0:1, :] += jnp.sum(s, axis=0, keepdims=True)
    stats_ref[1:2, :] += jnp.sum(s * s, axis=0, keepdims=True)


def _critic_tiled_kernel(stats_ref, state_ref, action_ref,
                         gamma_ref, beta_ref,
                         w1_ref, b1_ref,
                         w2a_ref, w2b_ref, b2_ref,
                         w3_ref, b3_ref,
                         w4_ref, b4_ref,
                         out_ref, *, inv_b):
    stats = stats_ref[...]                         # (2, S) f32
    mean = stats[0:1, :] * inv_b
    ex2 = stats[1:2, :] * inv_b
    var = ex2 - mean * mean

    state = state_ref[...].astype(jnp.float32)
    action = action_ref[...].astype(jnp.float32)

    x = (state - mean) * jax.lax.rsqrt(var + BN_EPS)
    x = x * gamma_ref[...] + beta_ref[...]

    q = _mlp_body(x, action,
                  w1_ref[...], b1_ref[...],
                  w2a_ref[...], w2b_ref[...], b2_ref[...],
                  w3_ref[...], b3_ref[...],
                  w4_ref[...], b4_ref[...])
    out_ref[...] = q.astype(out_ref.dtype)


# ----------------------------------------------------------------------------
# Wrapper
# ----------------------------------------------------------------------------
@functools.partial(jax.jit, static_argnames=("block_b",))
def critic_forward(state, action, params, *, block_b=1024):
    B, S = state.shape
    A = action.shape[1]
    p = params
    weights = (p["gamma"], p["beta"],
               p["w1"], p["b1"],
               p["w2a"], p["w2b"], p["b2"],
               p["w3"], p["b3"],
               p["w4"], p["b4"])

    if B <= block_b or B % block_b != 0:
        # Small batch: one grid point, everything resident in VMEM.
        return pl.pallas_call(
            _critic_fused_kernel,
            out_shape=jax.ShapeDtypeStruct((B, 1), jnp.float32),
            in_specs=[pl.BlockSpec(memory_space=pltpu.VMEM)
                      for _ in range(2 + len(weights))],
            out_specs=pl.BlockSpec(memory_space=pltpu.VMEM),
        )(state, action, *weights)

    # Large batch: two-pass. BN needs whole-batch statistics, so compute them
    # first with a sequential ("arbitrary") accumulation over batch tiles.
    n_tiles = B // block_b

    stats = pl.pallas_call(
        _bn_stats_kernel,
        out_shape=jax.ShapeDtypeStruct((2, S), jnp.float32),
        grid=(n_tiles,),
        in_specs=[pl.BlockSpec((block_b, S), lambda i: (i, 0))],
        out_specs=pl.BlockSpec((2, S), lambda i: (0, 0)),
        compiler_params=pltpu.CompilerParams(
            dimension_semantics=("arbitrary",)),
    )(state)

    const = lambda i: (0, 0)   # weights / stats stay VMEM-resident across grid
    w_specs = [pl.BlockSpec(w.shape, const) for w in weights]

    return pl.pallas_call(
        functools.partial(_critic_tiled_kernel, inv_b=1.0 / B),
        out_shape=jax.ShapeDtypeStruct((B, 1), jnp.float32),
        grid=(n_tiles,),
        in_specs=[pl.BlockSpec((2, S), const),
                  pl.BlockSpec((block_b, S), lambda i: (i, 0)),
                  pl.BlockSpec((block_b, A), lambda i: (i, 0)),
                  *w_specs],
        out_specs=pl.BlockSpec((block_b, 1), lambda i: (i, 0)),
        compiler_params=pltpu.CompilerParams(
            dimension_semantics=("parallel",)),   # megacore sharding on v7x
    )(stats, state, action, *weights)


# ----------------------------------------------------------------------------
# Parameter init (mirrors the PyTorch module's shapes / init style)
# ----------------------------------------------------------------------------
def init_params(key, state_size, action_size,
                fc1_size=256, fc2_size=128, fc3_size=128):
    ks = jax.random.split(key, 5)
    gain = (2.0 / (1.0 + NEG_SLOPE ** 2)) ** 0.5  # calculate_gain('leaky_relu')

    def xavier(k, fan_in, fan_out):
        bound = gain * (6.0 / (fan_in + fan_out)) ** 0.5
        # stored transposed: (in, out); bf16 storage halves weight DMA bytes
        return jax.random.uniform(
            k, (fan_in, fan_out), jnp.float32, -bound, bound).astype(jnp.bfloat16)

    w1 = xavier(ks[0], state_size, fc1_size)
    w2 = xavier(ks[1], fc1_size + action_size, fc2_size)
    w3 = xavier(ks[2], fc2_size, fc3_size)
    # fc4 weight kept in f32 as a (1, fc3_size) row for the VPU reduce
    w4 = jax.random.uniform(ks[3], (1, fc3_size), jnp.float32, -0.003, 0.003)

    def lin_bias(k, fan_in, n):
        b = 1.0 / (fan_in ** 0.5)  # PyTorch default Linear bias init
        return jax.random.uniform(k, (1, n), jnp.float32, -b, b)

    kb = jax.random.split(ks[4], 4)
    return dict(
        gamma=jnp.ones((1, state_size), jnp.float32),
        beta=jnp.zeros((1, state_size), jnp.float32),
        w1=w1, b1=lin_bias(kb[0], state_size, fc1_size),
        w2a=w2[:fc1_size], w2b=w2[fc1_size:],
        b2=lin_bias(kb[1], fc1_size + action_size, fc2_size),
        w3=w3, b3=lin_bias(kb[2], fc2_size, fc3_size),
        w4=w4, b4=lin_bias(kb[3], fc3_size, 1),
    )


if __name__ == "__main__":
    key = jax.random.PRNGKey(0)
    k_s, k_a, k_p, k_s2, k_a2 = jax.random.split(key, 5)

    state_size, action_size = 16, 4
    params = init_params(k_p, state_size, action_size)

    # Small batch -> single-block fused path.
    batch = 8
    state = jax.random.normal(k_s, (batch, state_size), jnp.float32)
    action = jax.random.normal(k_a, (batch, action_size), jnp.float32)
    q = critic_forward(state, action, params)
    jax.block_until_ready(q)
    assert q.shape == (batch, 1) and q.dtype == jnp.float32

    # Larger batch -> two-pass, batch-tiled, "parallel" grid path.
    big_b = 256
    state2 = jax.random.normal(k_s2, (big_b, state_size), jnp.float32)
    action2 = jax.random.normal(k_a2, (big_b, action_size), jnp.float32)
    q2_tiled = critic_forward(state2, action2, params, block_b=128)
    q2_single = critic_forward(state2, action2, params)  # reference: single block
    jax.block_until_ready((q2_tiled, q2_single))
    assert q2_tiled.shape == (big_b, 1) and q2_tiled.dtype == jnp.float32
    assert bool(jnp.allclose(q2_tiled, q2_single, atol=1e-3, rtol=1e-3))

    print("KERNEL_OK")
</pallas_src>

<mosaic_0001>
module attributes {stable_mosaic.version = 11 : i64} {
  func.func @_critic_fused_kernel(%arg0: memref<8x16xf32, #tpu.memory_space<vmem>>, %arg1: memref<8x4xf32, #tpu.memory_space<vmem>>, %arg2: memref<1x16xf32, #tpu.memory_space<vmem>>, %arg3: memref<1x16xf32, #tpu.memory_space<vmem>>, %arg4: memref<16x256xbf16, #tpu.memory_space<vmem>>, %arg5: memref<1x256xf32, #tpu.memory_space<vmem>>, %arg6: memref<256x128xbf16, #tpu.memory_space<vmem>>, %arg7: memref<4x128xbf16, #tpu.memory_space<vmem>>, %arg8: memref<1x128xf32, #tpu.memory_space<vmem>>, %arg9: memref<128x128xbf16, #tpu.memory_space<vmem>>, %arg10: memref<1x128xf32, #tpu.memory_space<vmem>>, %arg11: memref<1x128xf32, #tpu.memory_space<vmem>>, %arg12: memref<1x1xf32, #tpu.memory_space<vmem>>, %arg13: memref<8x1xf32, #tpu.memory_space<vmem>>) attributes {dimension_semantics = [], scalar_prefetch = 0 : i64, scratch_operands = 0 : i64, tpu.core_type = #tpu.core_type<tc>} {
    %c0 = arith.constant 0 : index
    %c0_0 = arith.constant 0 : index
    %0 = vector.load %arg0[%c0, %c0_0] : memref<8x16xf32, #tpu.memory_space<vmem>>, vector<8x16xf32>
    %c0_1 = arith.constant 0 : index
    %c0_2 = arith.constant 0 : index
    %1 = vector.load %arg1[%c0_1, %c0_2] : memref<8x4xf32, #tpu.memory_space<vmem>>, vector<8x4xf32>
    %cst = arith.constant dense<0.000000e+00> : vector<16xf32>
    %2 = vector.multi_reduction <add>, %0, %cst [0] : vector<8x16xf32> to vector<16xf32>
    %3 = vector.shape_cast %2 : vector<16xf32> to vector<1x16xf32>
    %cst_3 = arith.constant 1.250000e-01 : f32
    %4 = vector.broadcast %cst_3 : f32 to vector<1x16xf32>
    %5 = arith.mulf %3, %4 : vector<1x16xf32>
    %6 = arith.mulf %0, %0 : vector<8x16xf32>
    %cst_4 = arith.constant dense<0.000000e+00> : vector<16xf32>
    %7 = vector.multi_reduction <add>, %6, %cst_4 [0] : vector<8x16xf32> to vector<16xf32>
    %8 = vector.shape_cast %7 : vector<16xf32> to vector<1x16xf32>
    %cst_5 = arith.constant 1.250000e-01 : f32
    %9 = vector.broadcast %cst_5 : f32 to vector<1x16xf32>
    %10 = arith.mulf %8, %9 : vector<1x16xf32>
    %11 = arith.mulf %5, %5 : vector<1x16xf32>
    %12 = arith.subf %10, %11 : vector<1x16xf32>
    %13 = vector.broadcast %5 : vector<1x16xf32> to vector<8x16xf32>
    %14 = arith.subf %0, %13 : vector<8x16xf32>
    %cst_6 = arith.constant 9.99999974E-6 : f32
    %15 = vector.broadcast %cst_6 : f32 to vector<1x16xf32>
    %16 = arith.addf %12, %15 : vector<1x16xf32>
    %17 = math.rsqrt %16 : vector<1x16xf32>
    %18 = vector.broadcast %17 : vector<1x16xf32> to vector<8x16xf32>
    %19 = arith.mulf %14, %18 : vector<8x16xf32>
    %c0_7 = arith.constant 0 : index
    %c0_8 = arith.constant 0 : index
    %20 = vector.load %arg2[%c0_7, %c0_8] : memref<1x16xf32, #tpu.memory_space<vmem>>, vector<1x16xf32>
    %21 = vector.broadcast %20 : vector<1x16xf32> to vector<8x16xf32>
    %22 = arith.mulf %19, %21 : vector<8x16xf32>
    %c0_9 = arith.constant 0 : index
    %c0_10 = arith.constant 0 : index
    %23 = vector.load %arg3[%c0_9, %c0_10] : memref<1x16xf32, #tpu.memory_space<vmem>>, vector<1x16xf32>
    %24 = vector.broadcast %23 : vector<1x16xf32> to vector<8x16xf32>
    %25 = arith.addf %22, %24 : vector<8x16xf32>
    %c0_11 = arith.constant 0 : index
    %c0_12 = arith.constant 0 : index
    %26 = vector.load %arg4[%c0_11, %c0_12] : memref<16x256xbf16, #tpu.memory_space<vmem>>, vector<16x256xbf16>
    %c0_13 = arith.constant 0 : index
    %c0_14 = arith.constant 0 : index
    %27 = vector.load %arg5[%c0_13, %c0_14] : memref<1x256xf32, #tpu.memory_space<vmem>>, vector<1x256xf32>
    %c0_15 = arith.constant 0 : index
    %c0_16 = arith.constant 0 : index
    %28 = vector.load %arg6[%c0_15, %c0_16] : memref<256x128xbf16, #tpu.memory_space<vmem>>, vector<256x128xbf16>
    %c0_17 = arith.constant 0 : index
    %c0_18 = arith.constant 0 : index
    %29 = vector.load %arg7[%c0_17, %c0_18] : memref<4x128xbf16, #tpu.memory_space<vmem>>, vector<4x128xbf16>
    %c0_19 = arith.constant 0 : index
    %c0_20 = arith.constant 0 : index
    %30 = vector.load %arg8[%c0_19, %c0_20] : memref<1x128xf32, #tpu.memory_space<vmem>>, vector<1x128xf32>
    %c0_21 = arith.constant 0 : index
    %c0_22 = arith.constant 0 : index
    %31 = vector.load %arg9[%c0_21, %c0_22] : memref<128x128xbf16, #tpu.memory_space<vmem>>, vector<128x128xbf16>
    %c0_23 = arith.constant 0 : index
    %c0_24 = arith.constant 0 : index
    %32 = vector.load %arg10[%c0_23, %c0_24] : memref<1x128xf32, #tpu.memory_space<vmem>>, vector<1x128xf32>
    %c0_25 = arith.constant 0 : index
    %c0_26 = arith.constant 0 : index
    %33 = vector.load %arg11[%c0_25, %c0_26] : memref<1x128xf32, #tpu.memory_space<vmem>>, vector<1x128xf32>
    %c0_27 = arith.constant 0 : index
    %c0_28 = arith.constant 0 : index
    %34 = vector.load %arg12[%c0_27, %c0_28] : memref<1x1xf32, #tpu.memory_space<vmem>>, vector<1x1xf32>
    %35 = arith.truncf %25 : vector<8x16xf32> to vector<8x16xbf16>
    %cst_29 = arith.constant dense<0.000000e+00> : vector<8x256xf32>
    %36 = tpu.matmul %35, %26, %cst_29 {dimension_numbers = #tpu.dot_dimension_numbers<[1], [0], [0], [1], [0, 0, 1, 1], [], []>} : vector<8x16xbf16>, vector<16x256xbf16>, vector<8x256xf32> -> vector<8x256xf32>
    %37 = vector.broadcast %27 : vector<1x256xf32> to vector<8x256xf32>
    %38 = arith.addf %36, %37 : vector<8x256xf32>
    %cst_30 = arith.constant 0.000000e+00 : f32
    %39 = vector.broadcast %cst_30 : f32 to vector<8x256xf32>
    %40 = arith.cmpf ogt, %38, %39 : vector<8x256xf32>
    %cst_31 = arith.constant 0.00999999977 : f32
    %41 = vector.broadcast %cst_31 : f32 to vector<8x256xf32>
    %42 = arith.mulf %41, %38 : vector<8x256xf32>
    %43 = arith.select %40, %38, %42 : vector<8x256xi1>, vector<8x256xf32>
    %44 = arith.truncf %43 : vector<8x256xf32> to vector<8x256xbf16>
    %cst_32 = arith.constant dense<0.000000e+00> : vector<8x128xf32>
    %45 = tpu.matmul %44, %28, %cst_32 {dimension_numbers = #tpu.dot_dimension_numbers<[1], [0], [0], [1], [0, 0, 1, 1], [], []>} : vector<8x256xbf16>, vector<256x128xbf16>, vector<8x128xf32> -> vector<8x128xf32>
    %46 = arith.truncf %1 : vector<8x4xf32> to vector<8x4xbf16>
    %cst_33 = arith.constant dense<0.000000e+00> : vector<8x128xf32>
    %47 = tpu.matmul %46, %29, %cst_33 {dimension_numbers = #tpu.dot_dimension_numbers<[1], [0], [0], [1], [0, 0, 1, 1], [], []>} : vector<8x4xbf16>, vector<4x128xbf16>, vector<8x128xf32> -> vector<8x128xf32>
    %48 = arith.addf %45, %47 : vector<8x128xf32>
    %49 = vector.broadcast %30 : vector<1x128xf32> to vector<8x128xf32>
    %50 = arith.addf %48, %49 : vector<8x128xf32>
    %cst_34 = arith.constant 0.000000e+00 : f32
    %51 = vector.broadcast %cst_34 : f32 to vector<8x128xf32>
    %52 = arith.cmpf ogt, %50, %51 : vector<8x128xf32>
    %cst_35 = arith.constant 0.00999999977 : f32
    %53 = vector.broadcast %cst_35 : f32 to vector<8x128xf32>
    %54 = arith.mulf %53, %50 : vector<8x128xf32>
    %55 = arith.select %52, %50, %54 : vector<8x128xi1>, vector<8x128xf32>
    %56 = arith.truncf %55 : vector<8x128xf32> to vector<8x128xbf16>
    %cst_36 = arith.constant dense<0.000000e+00> : vector<8x128xf32>
    %57 = tpu.matmul %56, %31, %cst_36 {dimension_numbers = #tpu.dot_dimension_numbers<[1], [0], [0], [1], [0, 0, 1, 1], [], []>} : vector<8x128xbf16>, vector<128x128xbf16>, vector<8x128xf32> -> vector<8x128xf32>
    %58 = vector.broadcast %32 : vector<1x128xf32> to vector<8x128xf32>
    %59 = arith.addf %57, %58 : vector<8x128xf32>
    %cst_37 = arith.constant 0.000000e+00 : f32
    %60 = vector.broadcast %cst_37 : f32 to vector<8x128xf32>
    %61 = arith.cmpf ogt, %59, %60 : vector<8x128xf32>
    %cst_38 = arith.constant 0.00999999977 : f32
    %62 = vector.broadcast %cst_38 : f32 to vector<8x128xf32>
    %63 = arith.mulf %62, %59 : vector<8x128xf32>
    %64 = arith.select %61, %59, %63 : vector<8x128xi1>, vector<8x128xf32>
    %65 = vector.broadcast %33 : vector<1x128xf32> to vector<8x128xf32>
    %66 = arith.mulf %64, %65 : vector<8x128xf32>
    %cst_39 = arith.constant dense<0.000000e+00> : vector<8xf32>
    %67 = vector.multi_reduction <add>, %66, %cst_39 [1] : vector<8x128xf32> to vector<8xf32>
    %68 = vector.shape_cast %67 : vector<8xf32> to vector<8x1xf32>
    %69 = vector.broadcast %34 : vector<1x1xf32> to vector<8x1xf32>
    %70 = arith.addf %68, %69 : vector<8x1xf32>
    %c0_40 = arith.constant 0 : index
    %c0_41 = arith.constant 0 : index
    %71 = vector.load %arg13[%c0_40, %c0_41] : memref<8x1xf32, #tpu.memory_space<vmem>>, vector<8x1xf32>
    tpu.vector_store %arg13[%c0_40, %c0_41], %70 {strides = array<i32>} : memref<8x1xf32, #tpu.memory_space<vmem>>, vector<8x1xf32>,
    return
  }
}

</mosaic_0001>

<bundles_post_ra>
// kernel: critic_forward.1
= control target key start
LH: loop header
LB: loop body
LE: loop exit
PB: predicated region body
PF: predicated region fallthrough
CT: control target
= control target key end

     0   :  { %s1005_s0 = inlined_call_operand.hbm [shape: f32[8,16], index: 0, kind: input, shape index: {}]   ;;  %s1006_s1 = inlined_call_operand.vmem [shape: f32[8,4], index: 1, kind: input, shape index: {}]   ;;  %s1007_s2 = inlined_call_operand.hbm [shape: f32[1,16], index: 2, kind: input, shape index: {}]   ;;  %s1008_s3 = inlined_call_operand.hbm [shape: f32[1,16], index: 3, kind: input, shape index: {}]   ;;  %s1009_s4 = inlined_call_operand.vmem [shape: bf16[16,256], index: 4, kind: input, shape index: {}]   ;;  %s1010_s5 = inlined_call_operand.vmem [shape: f32[1,256], index: 5, kind: input, shape index: {}]   ;;  %s1011_s6 = inlined_call_operand.hbm [shape: bf16[256,128], index: 6, kind: input, shape index: {}]   ;;  %s1012_s7 = inlined_call_operand.vmem [shape: bf16[4,128], index: 7, kind: input, shape index: {}]   ;;  %s1013_s8 = inlined_call_operand.hbm [shape: f32[1,128], index: 8, kind: input, shape index: {}]   ;;  %s1014_s9 = inlined_call_operand.hbm [shape: bf16[128,128], index: 9, kind: input, shape index: {}]   ;;  %s1015_s10 = inlined_call_operand.hbm [shape: f32[1,128], index: 10, kind: input, shape index: {}]   ;;  %s1016_s11 = inlined_call_operand.vmem [shape: f32[1,128], index: 11, kind: input, shape index: {}]   ;;  %s1017_s12 = inlined_call_operand.<no memory space> [shape: f32[1,1], index: 12, kind: input, shape index: {}]   ;;  %s1018_s13 = inlined_call_operand.vmem [shape: f32[8,1], index: 13, kind: output, shape index: {}]  }
   0x1   :  { %v18_v0 = vstv %s1017_s12 }
   0x2   :  { %19 = vst [vmem:[#allocation2] sm:$0x1] %v18_v0 }
   0x3   :  { %20 = vsyncpa [#allocation4], 0 }
   0x4   :  { %21 = vsyncpa [#allocation6], 0 }
   0x5   :  { %22 = vsyncpa [#allocation9], 0  ;;  %s42_s29 = sshll.u32 %s1007_s2, 4  ;;  %s43_s29 = int_to_ptr.hbm [resolvable:$true] %s42_s29 }
   0x6   :  { %23 = vsyncpa [#allocation12], 0  ;;  %s865_s30 = smov [#allocation5]   ;;  %s67_s17 = sshll.u32 %s1011_s6, 4  ;;  %s68_s17 = int_to_ptr.hbm [resolvable:$true] %s67_s17 }
   0x7   :  { %s44_s14 = sshll.u32 %s865_s30, 4  ;;  %s866_s12 = smov [#allocation8]   ;;  %s45_s14 = int_to_ptr.vmem [resolvable:$true] %s44_s14 }
   0x8   :  { %47 = dma.hbm_to_vmem [thread:$0]  %s43_s29, 16, %s45_s14, [#allocation6]  }
   0x9   :  { %s69_s18 = sshll.u32 %s866_s12, 4  ;;  %s867_s19 = smov 64   ;;  %s70_s18 = int_to_ptr.vmem [resolvable:$true] %s69_s18 }
   0xa   :  { %s868_s20 = smov 4   ;;  %s93_s2 = sshll.u32 %s1014_s9, 4  ;;  %s94_s2 = int_to_ptr.hbm [resolvable:$true] %s93_s2 }
   0xb   :  { %75 = dma.hbm_to_vmem [thread:$0]  %s68_s17, 2048, %s70_s18, [#allocation9], %s867_s19, %s867_s19, %s868_s20  }
   0xc   :  { %s869_s23 = smov [#allocation11]   ;;  %s29_s6 = sshll.u32 %s1005_s0, 4  ;;  %s30_s6 = int_to_ptr.hbm [resolvable:$true] %s29_s6 }
   0xd   :  { %s95_s24 = sshll.u32 %s869_s23, 4  ;;  %s870_s27 = smov [#allocation3]   ;;  %s96_s24 = int_to_ptr.vmem [resolvable:$true] %s95_s24 }
   0xe   :  { %101 = dma.hbm_to_vmem [thread:$0]  %s94_s2, 1024, %s96_s24, [#allocation12], %s867_s19, %s867_s19, %s868_s20  }
   0xf   :  { %s31_s28 = sshll.u32 %s870_s27, 4  ;;  %s53_s14 = sshll.u32 %s1008_s3, 4  ;;  %s32_s28 = int_to_ptr.vmem [resolvable:$true] %s31_s28  ;;  %s54_s14 = int_to_ptr.hbm [resolvable:$true] %s53_s14 }
  0x10   :  { %34 = dma.hbm_to_vmem [thread:$0]  %s30_s6, 128, %s32_s28, [#allocation4]  }
  0x11   :  { %s83_s16 = sshll.u32 %s1013_s8, 4  ;;  %s871_s17 = smov [#allocation7]   ;;  %s84_s16 = int_to_ptr.hbm [resolvable:$true] %s83_s16 }
  0x12   :  { %s55_s12 = sshll.u32 %s871_s17, 4  ;;  %s872_s0 = smov [#allocation10]   ;;  %s56_s12 = int_to_ptr.vmem [resolvable:$true] %s55_s12 }
  0x13   :  { %58 = dma.hbm_to_vmem [thread:$0]  %s54_s14, 16, %s56_s12, [#allocation6]  }
  0x14   :  { %s85_s18 = sshll.u32 %s872_s0, 4  ;;  %s107_s21 = sshll.u32 %s1015_s10, 4  ;;  %s86_s18 = int_to_ptr.vmem [resolvable:$true] %s85_s18  ;;  %s108_s21 = int_to_ptr.hbm [resolvable:$true] %s107_s21 }
  0x15   :  { %88 = dma.hbm_to_vmem [thread:$0]  %s84_s16, 16, %s86_s18, [#allocation9]  }
  0x16   :  { %s873_s3 = smov [#allocation13]  }
  0x17   :  { %s109_s22 = sshll.u32 %s873_s3, 4  ;;  %s110_s22 = int_to_ptr.vmem [resolvable:$true] %s109_s22 }
  0x18   :  { %112 = dma.hbm_to_vmem [thread:$0]  %s108_s21, 16, %s110_s22, [#allocation12]  }
  0x19   :  { %857 = dma.done.wait [#allocation4], 128  }
  0x1a   :  { %858 = vsyncadd [#allocation4], 4294967168 }
  0x1b   :  { %859 = dma.done.wait [#allocation6], 32  }
  0x1c   :  { %860 = vsyncadd [#allocation6], 4294967264 }
  0x1d   :  { %861 = dma.done.wait [#allocation9], 2064  }
  0x1e   :  { %862 = vsyncadd [#allocation9], 4294965232 }
  0x1f   :  { %863 = dma.done.wait [#allocation12], 1040  }
  0x20   :  { %864 = vsyncadd [#allocation12], 4294966256  ;;  %vm148_vm0 = vcmask 130048   ;;  %v541_v1 = vld [vmem:[%s1009_s4] sm:$0xf]  ;;  %v663_v26 = vld [vmem:[#allocation8 + $0x78] sm:$0xff] }
  0x21   :  { %v647_v2 = vld [vmem:[%s1009_s4 + $0x4] sm:$0xf0]  ;;  %v646_v21 = vld [vmem:[%s1009_s4 + $0x4] sm:$0xf]  ;;  %v543_v22 = vld [vmem:[%s1009_s4 + $0x8] sm:$0xf0]  ;;  %431 = vmatpush.bf16.msra.mxu0 %v663_v26 }
  0x22   :  { %v974_v3 = vld [vmem:[#allocation3] sm:$0xff]  ;;  %v542_v4 = vor.u32 %v647_v2, %v541_v1  ;;  %v546_v23 = vor.u32 %v646_v21, %v543_v22  ;;  %vm305_vm1 = vcmask 1041408   ;;  %v661_v34 = vld [vmem:[#allocation8 + $0x68] sm:$0xff]  ;;  %v660_v36 = vld [vmem:[#allocation8 + $0x60] sm:$0xff]  ;;  %vm301_vm5 = vcmask 31744  }
  0x23   :  { %v149_v5 = vsel %vm148_vm0, %v974_v3, 0.0  ;;  %v157_v6 = vmul.f32 %v974_v3, %v974_v3  ;;  %v655_v27 = vld [vmem:[#allocation8 + $0x38] sm:$0xff]  ;;  %v662_v29 = vld [vmem:[#allocation8 + $0x70] sm:$0xff]  ;;  %v653_v35 = vld [vmem:[#allocation8 + $0x28] sm:$0xff]  ;;  %vm529_vm10 = vcmask 7168  }
  0x24   :  { %v150_v7 = vrot.slane %v149_v5, 4  ;;  %273 = vmatpush.bf16.msra.mxu2 %v542_v4  ;;  %286 = vmatpush.bf16.msra.mxu1 %v546_v23  ;;  %v654_v30 = vld [vmem:[#allocation8 + $0x30] sm:$0xff]  ;;  %v652_v37 = vld [vmem:[#allocation8 + $0x20] sm:$0xff]  ;;  %v659_v40 = vld [vmem:[#allocation8 + $0x58] sm:$0xff] }
  0x25   :  { %v158_v8 = vsel %vm148_vm0, %v157_v6, 0.0  ;;  %418 = vmatpush.bf16.msra.mxu3 %v655_v27  ;;  %v226_v31 = vld [vmem:[%s1012_s7] sm:$0x3]  ;;  %432 = vmatpush.bf16.msra.mxu0 %v662_v29  ;;  %v651_v41 = vld [vmem:[#allocation8 + $0x18] sm:$0xff]  ;;  %v657_v56 = vld [vmem:[#allocation8 + $0x48] sm:$0xff] }
  0x26   :  { %v151_v9 = vadd.f32 %v150_v7, %v149_v5  ;;  %v159_v10 = vrot.slane %v158_v8, 4  ;;  %v307_v33 = vsel %vm305_vm1, %v226_v31, 0  ;;  %v658_v44 = vld [vmem:[#allocation8 + $0x50] sm:$0xff]  ;;  %v681_v49 = vld [vmem:[#allocation5] ss:$0 sm:$0xff]  ;;  %v649_v59 = vld [vmem:[#allocation8 + $0x8] sm:$0xff] }
  0x27   :  { %v650_v45 = vld [vmem:[#allocation8 + $0x10] sm:$0xff]  ;;  %v682_v52 = vld [vmem:[#allocation7] ss:$0 sm:$0xff]  ;;  %v656_v60 = vld [vmem:[#allocation8 + $0x40] sm:$0xff] }
  0x28   :  { %v152_v11 = vrot.slane %v151_v9, 2  ;;  %v160_v12 = vadd.f32 %v159_v10, %v158_v8  ;;  %316 = vmatpush.bf16.msrb.mxu2 %v307_v33  ;;  %v147_v57 = vld [vmem:[%s1006_s1] sm:$0xff]  ;;  %v648_v61 = vld [vmem:[#allocation8] sm:$0xff]  ;;  %v669_v0 = vld [vmem:[#allocation11 + $0x28] sm:$0xff] }
  0x29   :  { %419 = vmatpush.bf16.msra.mxu3 %v654_v30  ;;  %433 = vmatpush.bf16.msra.mxu0 %v661_v34  ;;  %v300_v58 = vpack.c.bf16 %v147_v57, %v147_v57  ;;  %v671_v62 = vld [vmem:[#allocation11 + $0x38] sm:$0xff]  ;;  %v670_v63 = vld [vmem:[#allocation11 + $0x30] sm:$0xff]  ;;  %v665_v21 = vld [vmem:[#allocation11 + $0x8] sm:$0xff] }
  0x2a   :  { %v153_v13 = vadd.f32 %v152_v11, %v151_v9  ;;  %v161_v14 = vrot.slane %v160_v12, 2  ;;  %503 = vmatpush.bf16.msrb.mxu1 %v671_v62  ;;  %v193_v1 = vld [vmem:[%s1010_s5] sm:$0x3]  ;;  %v664_v22 = vld [vmem:[#allocation11] sm:$0xff]  ;;  %v683_v27 = vld [vmem:[#allocation10] ss:$0 sm:$0xff] }
  0x2b   :  { %v250_v2 = vperm.slane %v193_v1, 1  ;;  %v249_v6 = vperm.slane %v193_v1, 0  ;;  %v684_v34 = vld [vmem:[#allocation13] ss:$0 sm:$0xff] }
  0x2c   :  { %v154_v15 = vrot.slane %v153_v13, 1  ;;  %v162_v16 = vadd.f32 %v161_v14, %v160_v12 }
  0x2d   :  { %420 = vmatpush.bf16.msra.mxu3 %v653_v35  ;;  %434 = vmatpush.bf16.msra.mxu0 %v660_v36 }
  0x2e   :  { %v155_v17 = vadd.f32 %v154_v15, %v153_v13  ;;  %v163_v18 = vrot.slane %v162_v16, 1  ;;  %504 = vmatpush.bf16.msrb.mxu1 %v670_v63 }
  0x30   :  { %v156_v19 = vmul.f32 0.125, %v155_v17  ;;  %v164_v20 = vadd.f32 %v163_v18, %v162_v16  ;;  %v668_v16 = vld [vmem:[#allocation11 + $0x20] sm:$0xff]  ;;  %v667_v17 = vld [vmem:[#allocation11 + $0x18] sm:$0xff] }
  0x31   :  { %421 = vmatpush.bf16.msra.mxu3 %v652_v37  ;;  %435 = vmatpush.bf16.msra.mxu0 %v659_v40  ;;  %v685_v37 = vld [vmem:[%s1016_s11] ss:$0 sm:$0xff] }
  0x32   :  { %v165_v24 = vmul.f32 0.125, %v164_v20  ;;  %v166_v25 = vmul.f32 %v156_v19, %v156_v19  ;;  %v168_v47 = vsub.f32 %v974_v3, %v156_v19  ;;  %505 = vmatpush.bf16.msrb.mxu1 %v669_v0  ;;  %v666_v19 = vld [vmem:[#allocation11 + $0x10] sm:$0xff] }
  0x34   :  { %v167_v28 = vsub.f32 %v165_v24, %v166_v25 }
  0x35   :  { %422 = vmatpush.bf16.msra.mxu3 %v651_v41  ;;  %436 = vmatpush.bf16.msra.mxu0 %v658_v44 }
  0x36   :  { %v169_v32 = vadd.f32 1e-05, %v167_v28  ;;  %506 = vmatpush.bf16.msrb.mxu1 %v668_v16 }
  0x38   :  { %687 = vrsqrt.f32 %v169_v32  ;;  %vm176_vm2 = vweird.f32 %v169_v32 }
  0x39   :  { %423 = vmatpush.bf16.msra.mxu3 %v650_v45  ;;  %437 = vmatpush.bf16.msra.mxu0 %v657_v56 }
  0x3a   :  { %507 = vmatpush.bf16.msrb.mxu1 %v667_v17 }
  0x3d   :  { %424 = vmatpush.bf16.msra.mxu3 %v649_v59  ;;  %438 = vmatpush.bf16.msra.mxu0 %v656_v60 }
  0x3e   :  { %v688_v38 = vpop.eup %687  ;;  %508 = vmatpush.bf16.msrb.mxu1 %v666_v19 }
  0x3f   :  { %v171_v39 = vmul.f32 %v688_v38, %v169_v32  ;;  %vm177_vm3 = vweird.f32 %v688_v38 }
  0x40   :  { %vm178_vm4 = vmor %vm176_vm2, %vm177_vm3 }
  0x41   :  { %v172_v42 = vmul.f32 %v688_v38, %v171_v39  ;;  %425 = vmatpush.bf16.msra.mxu3 %v648_v61 }
  0x42   :  { %509 = vmatpush.bf16.msrb.mxu1 %v665_v21 }
  0x43   :  { %v173_v43 = vmul.f32 0.5, %v172_v42  ;;  %v686_v42 = vld [vmem:[#allocation2] ss:$0 sm:$0xff] }
  0x45   :  { %v174_v46 = vsub.f32 1.5, %v173_v43 }
  0x46   :  { %510 = vmatpush.bf16.msrb.mxu1 %v664_v22 }
  0x47   :  { %v175_v48 = vmul.f32 %v688_v38, %v174_v46 }
  0x49   :  { %v179_v50 = vsel %vm178_vm4, %v688_v38, %v175_v48 }
  0x4a   :  { %v180_v51 = vmul.f32 %v179_v50, %v168_v47 }
  0x4c   :  { %v185_v53 = vmul.f32 %v681_v49, %v180_v51 }
  0x4e   :  { %v190_v54 = vadd.f32 %v682_v52, %v185_v53 }
  0x50   :  { %v247_v55 = vpack.c.bf16 %v190_v54, %v190_v54 }
  0x52   :  { %547 = vmatmul.msk.bf16.vlgmr.msra.gmra.mxu2 %vm148_vm0, %v247_v55  ;;  %548 = vmatmul.msk.bf16.vlgmr.msra.gmra.mxu1 %vm148_vm0, %v247_v55 }
  0x62   :  { %549 = vmatmul.msk.bf16.vlgmr.msrb.gmra.mxu2 %vm301_vm5, %v300_v58 }
  0xcf   :  { %v288_v3 = vpop.f32.mrf.mxu1 }
  0xd0   :  { %v289_v4 = vadd.f32 %v288_v3, %v250_v2 }
  0xd2   :  { %v295_v5 = vmul.f32 0.01, %v289_v4  ;;  %vm293_vm6 = vcmp.gt.f32.partialorder %v289_v4, 0.0 }
  0xd4   :  { %v297_v7 = vsel %vm293_vm6, %v289_v4, %v295_v5 }
  0xd5   :  { %v275_v8 = vpop.f32.mrf.mxu2  ;;  %v299_v9 = vpack.c.bf16 %v297_v7, %v297_v7 }
  0xd6   :  { %v276_v10 = vadd.f32 %v275_v8, %v249_v6 }
  0xd7   :  { %439 = vmatmul.bf16.vlgmr.msra.gmra.mxu0 %v299_v9  ;;  %v290_v11 = vpop.f32.mrf.mxu1 }
  0xd8   :  { %v294_v12 = vmul.f32 0.01, %v276_v10  ;;  %vm292_vm7 = vcmp.gt.f32.partialorder %v276_v10, 0.0 }
  0xda   :  { %v296_v13 = vsel %vm292_vm7, %v276_v10, %v294_v12 }
  0xdb   :  { %v298_v14 = vpack.c.bf16 %v296_v13, %v296_v13 }
  0xdd   :  { %v277_v15 = vpop.f32.mrf.mxu2  ;;  %426 = vmatmul.bf16.vlgmr.msra.gmra.mxu3 %v298_v14 }
  0xe5   :  { %v318_v18 = vpop.f32.mrf.mxu2 }
  0xed   :  { %v320_v20 = vpop.f32.mrf.mxu2 }
 0x154   :  { %v440_v23 = vpop.f32.mrf.mxu0 }
 0x15c   :  { %v442_v24 = vpop.f32.mrf.mxu0 }
 0x160   :  { %v427_v25 = vpop.f32.mrf.mxu3 }
 0x161   :  { %v428_v26 = vadd.f32 %v427_v25, %v318_v18 }
 0x163   :  { %v441_v28 = vadd.f32 %v440_v23, %v428_v26 }
 0x165   :  { %v447_v29 = vadd.f32 %v683_v27, %v441_v28 }
 0x167   :  { %vm448_vm8 = vcmp.gt.f32.partialorder %v447_v29, 0.0  ;;  %v449_v30 = vmul.f32 0.01, %v447_v29 }
 0x168   :  { %v429_v31 = vpop.f32.mrf.mxu3 }
 0x169   :  { %v450_v32 = vsel %vm448_vm8, %v447_v29, %v449_v30 }
 0x16a   :  { %v451_v33 = vpack.c.bf16 %v450_v32, %v450_v32 }
 0x16c   :  { %511 = vmatmul.bf16.vlgmr.msrb.gmra.mxu1 %v451_v33 }
 0x1e9   :  { %v512_v35 = vpop.f32.mrf.mxu1 }
 0x1ea   :  { %v513_v36 = vadd.f32 %v684_v34, %v512_v35 }
 0x1ec   :  { %v517_v38 = vmul.f32 0.01, %v513_v36  ;;  %vm516_vm9 = vcmp.gt.f32.partialorder %v513_v36, 0.0 }
 0x1ee   :  { %v518_v39 = vsel %vm516_vm9, %v513_v36, %v517_v38 }
 0x1ef   :  { %v522_v40 = vmul.f32 %v685_v37, %v518_v39 }
 0x1f1   :  { %v514_v41 = vpop.f32.mrf.mxu1  ;;  %523 = vadd.xlane.f32.xlu0 %v522_v40 }
 0x264   :  { %v524_v43 = vpop.xlane.xlu0 %523 }
 0x265   :  { %v528_v44 = vadd.f32 %v686_v42, %v524_v43 }
 0x267   :  { %530 = vst.msk [vmem:[%s1018_s13] sm:$0xff] %vm529_vm10, %v528_v44 }
 0x268   :  { %535 = vsyncpa [#allocation4], 1 }
 0x269   :  { %536 = vsyncpa [#allocation6], 1 }
 0x26a   :  { %537 = vsyncpa [#allocation9], 1 }
 0x26b   :  { %538 = vsyncpa [#allocation12], 1 }

</bundles_post_ra>
